<compile_context>
chip_gen: v7x
topology: tpu7x:2x2x1
jax: 0.10.0
libtpu: 0.0.40
codegen_flags: <defaults>
</compile_context>

<pallas_src>
import jax
import jax.numpy as jnp
from jax.experimental import pallas as pl
from jax.experimental.pallas import tpu as pltpu

_LANES = 128
_SUBLANES = 8
_MAX_TILE_ROWS = 512  # 512x128 f32 = 256 KiB per block per buffer


# ----------------------------- kernels --------------------------------------

def _write_partial(kl_ref, partial):
    # Write the scalar partial to element (0, 0) of the (8, 128) block, zeros
    # elsewhere, so the wrapper can simply jnp.sum() all partial blocks.
    row = jax.lax.broadcasted_iota(jnp.int32, kl_ref.shape, 0)
    lane = jax.lax.broadcasted_iota(jnp.int32, kl_ref.shape, 1)
    kl_ref[...] = jnp.where((row == 0) & (lane == 0), partial, jnp.float32(0.0))


def _reparam_kl_kernel(mu_ref, lv_ref, eps_ref, z_ref, kl_ref):
    # f32 compute regardless of input dtype (v5e has no bf16 VPU/EUP).
    mu = mu_ref[...].astype(jnp.float32)
    lv = lv_ref[...].astype(jnp.float32)
    eps = eps_ref[...].astype(jnp.float32)

    std = jnp.exp(0.5 * lv)                       # single EUP exp per element
    z_ref[...] = (mu + eps * std).astype(z_ref.dtype)

    var = std * std                               # == exp(lv), no 2nd exp
    # Padded elements have mu=0, lv=0 -> term is exactly 0, so they don't
    # contribute to the KL partial sum.
    kl_elem = -0.5 * (1.0 + lv - mu * mu - var)
    _write_partial(kl_ref, jnp.sum(kl_elem))


def _kl_only_kernel(mu_ref, lv_ref, kl_ref):
    mu = mu_ref[...].astype(jnp.float32)
    lv = lv_ref[...].astype(jnp.float32)
    kl_elem = -0.5 * (1.0 + lv - mu * mu - jnp.exp(lv))
    _write_partial(kl_ref, jnp.sum(kl_elem))


# ----------------------------- layout helpers --------------------------------

def _round_up(n, m):
    return (n + m - 1) // m * m


def _slab_geometry(n_elems):
    """rows_pad, tile_rows, grid for a lane-dense (rows, 128) slab layout."""
    rows = _round_up(n_elems, _LANES) // _LANES
    tile_rows = min(_MAX_TILE_ROWS, _round_up(rows, _SUBLANES))
    rows_pad = _round_up(rows, tile_rows)
    return rows_pad, tile_rows, rows_pad // tile_rows


def _to_slab(x, rows_pad):
    """Flatten, zero-pad and reshape to a lane-dense (rows_pad, 128) slab."""
    flat = x.reshape(-1)
    total = rows_pad * _LANES
    flat = jnp.pad(flat, (0, total - flat.shape[0]))
    return flat.reshape(rows_pad, _LANES)


# ----------------------------- wrapper ---------------------------------------

class VAEEncoderPallas:
    """Pallas port of the (generic) PyTorch VAEEncoder."""

    def __init__(self, latent_dim: int = 20, kws_loss: dict = {"reduction": "sum"}):
        self.latent_dim = latent_dim
        self.kws_loss = kws_loss
        # Generic encoder has no learnable parameters.
        # TODO(synk): concrete VAE subclasses would add conv/linear weights.

    # --- forward: identity. No kernel -> no HBM round trip, no launch cost. --
    def forward(self, x):
        return x

    # --- fused reparameterize + KL (single pass over mu/logvar) -------------
    def reparameterize_and_kl(self, mu, logvar, key):
        eps = jax.random.normal(key, mu.shape, dtype=mu.dtype)  # torch.randn_like
        n = int(mu.size)
        itemsize = jnp.dtype(mu.dtype).itemsize
        rows_pad, tile_rows, grid = _slab_geometry(n)

        mu_s = _to_slab(mu, rows_pad)
        lv_s = _to_slab(logvar, rows_pad)
        eps_s = _to_slab(eps, rows_pad)

        io_spec = pl.BlockSpec((tile_rows, _LANES), lambda b: (b, 0))
        kl_spec = pl.BlockSpec((_SUBLANES, _LANES), lambda b: (b, 0))

        z_s, kl_parts = pl.pallas_call(
            _reparam_kl_kernel,
            out_shape=(
                jax.ShapeDtypeStruct((rows_pad, _LANES), mu.dtype),
                jax.ShapeDtypeStruct((grid * _SUBLANES, _LANES), jnp.float32),
            ),
            grid=(grid,),
            in_specs=[io_spec, io_spec, io_spec],
            out_specs=(io_spec, kl_spec),
            compiler_params=pltpu.CompilerParams(
                dimension_semantics=("parallel",)),
            cost_estimate=pl.CostEstimate(
                flops=int(8 * n),
                transcendentals=int(n),
                bytes_accessed=int(4 * n * itemsize)),
        )(mu_s, lv_s, eps_s)

        z = z_s.reshape(-1)[:n].reshape(mu.shape)
        kl_total = jnp.sum(kl_parts)
        if self.kws_loss.get("reduction", "sum") != "sum":
            kl_total = kl_total / mu.shape[0]
        return z, kl_total

    def reparameterize(self, mu, logvar, key):
        z, _ = self.reparameterize_and_kl(mu, logvar, key)
        return z

    # --- standalone KL (when z is not needed) --------------------------------
    def divergence_loss(self, mu, logvar):
        n = int(mu.size)
        itemsize = jnp.dtype(mu.dtype).itemsize
        rows_pad, tile_rows, grid = _slab_geometry(n)

        mu_s = _to_slab(mu, rows_pad)
        lv_s = _to_slab(logvar, rows_pad)

        io_spec = pl.BlockSpec((tile_rows, _LANES), lambda b: (b, 0))
        kl_spec = pl.BlockSpec((_SUBLANES, _LANES), lambda b: (b, 0))

        kl_parts = pl.pallas_call(
            _kl_only_kernel,
            out_shape=jax.ShapeDtypeStruct((grid * _SUBLANES, _LANES), jnp.float32),
            grid=(grid,),
            in_specs=[io_spec, io_spec],
            out_specs=kl_spec,
            compiler_params=pltpu.CompilerParams(
                dimension_semantics=("parallel",)),
            cost_estimate=pl.CostEstimate(
                flops=int(6 * n),
                transcendentals=int(n),
                bytes_accessed=int(2 * n * itemsize)),
        )(mu_s, lv_s)

        kl_total = jnp.sum(kl_parts)
        if self.kws_loss.get("reduction", "sum") == "sum":
            return kl_total
        return kl_total / mu.shape[0]


# ----------------------------- main -----------------------------------------

if __name__ == "__main__":
    key = jax.random.PRNGKey(0)

    # ---- small case: module default latent_dim=20, batch=8 -----------------
    B, D = 8, 20
    kmu, klv, keps, kx = jax.random.split(key, 4)
    x = jax.random.normal(kx, (B, D), dtype=jnp.float32)
    mu = jax.random.normal(kmu, (B, D), dtype=jnp.float32) * 0.5
    logvar = jax.random.normal(klv, (B, D), dtype=jnp.float32) * 0.1

    enc = VAEEncoderPallas(latent_dim=D, kws_loss={"reduction": "sum"})

    # forward: identity (no kernel)
    y = enc.forward(x)
    assert y is x or bool(jnp.allclose(y, x)), "forward (identity) mismatch"

    # fused reparameterize + KL
    z, kl = jax.block_until_ready(enc.reparameterize_and_kl(mu, logvar, keps))
    eps_ref = jax.random.normal(keps, mu.shape, dtype=mu.dtype)
    z_ref = mu + eps_ref * jnp.exp(0.5 * logvar)
    kl_ref = jnp.sum(-0.5 * jnp.sum(1.0 + logvar - mu**2 - jnp.exp(logvar), axis=1))
    assert jnp.allclose(z, z_ref, atol=1e-5, rtol=1e-5), "reparameterize mismatch"
    assert jnp.allclose(kl, kl_ref, atol=1e-4, rtol=1e-4), "fused KL mismatch"

    # standalone divergence_loss, 'mean' reduction
    enc_mean = VAEEncoderPallas(latent_dim=D, kws_loss={"reduction": "mean"})
    kl_mean = jax.block_until_ready(enc_mean.divergence_loss(mu, logvar))
    kl_mean_ref = jnp.mean(-0.5 * jnp.sum(1.0 + logvar - mu**2 - jnp.exp(logvar), axis=1))
    assert jnp.allclose(kl_mean, kl_mean_ref, atol=1e-4, rtol=1e-4), "KL mean mismatch"

    # ---- larger case: exercises the multi-block batch grid + padding -------
    B2, D2 = 4096, 20
    kmu2, klv2, keps2 = jax.random.split(jax.random.PRNGKey(1), 3)
    mu2 = jax.random.normal(kmu2, (B2, D2), dtype=jnp.float32) * 0.5
    lv2 = jax.random.normal(klv2, (B2, D2), dtype=jnp.float32) * 0.1
    z2, kl2 = jax.block_until_ready(enc.reparameterize_and_kl(mu2, lv2, keps2))
    eps2 = jax.random.normal(keps2, mu2.shape, dtype=mu2.dtype)
    z2_ref = mu2 + eps2 * jnp.exp(0.5 * lv2)
    kl2_ref = jnp.sum(-0.5 * jnp.sum(1.0 + lv2 - mu2**2 - jnp.exp(lv2), axis=1))
    assert jnp.allclose(z2, z2_ref, atol=1e-5, rtol=1e-5), "large reparam mismatch"
    assert jnp.allclose(kl2, kl2_ref, atol=1e-2, rtol=1e-4), "large KL mismatch"

    print("KERNEL_OK")
</pallas_src>

<mosaic_0001>
module attributes {stable_mosaic.version = 11 : i64} {
  func.func @_reparam_kl_kernel(%arg0: i32, %arg1: memref<8x128xf32, #tpu.memory_space<vmem>>, %arg2: memref<8x128xf32, #tpu.memory_space<vmem>>, %arg3: memref<8x128xf32, #tpu.memory_space<vmem>>, %arg4: memref<8x128xf32, #tpu.memory_space<vmem>>, %arg5: memref<8x128xf32, #tpu.memory_space<vmem>>) attributes {dimension_semantics = [#tpu.dimension_semantics<parallel>], iteration_bounds = array<i64: 1>, scalar_prefetch = 0 : i64, scratch_operands = 0 : i64, tpu.core_type = #tpu.core_type<tc>, window_params = [{transform_indices = @transform_0, window_bounds = array<i64: 8, 128>}, {transform_indices = @transform_1, window_bounds = array<i64: 8, 128>}, {transform_indices = @transform_2, window_bounds = array<i64: 8, 128>}, {transform_indices = @transform_3, window_bounds = array<i64: 8, 128>}, {transform_indices = @transform_4, window_bounds = array<i64: 8, 128>}]} {
    %c0 = arith.constant 0 : index
    %c0_0 = arith.constant 0 : index
    %0 = vector.load %arg1[%c0, %c0_0] : memref<8x128xf32, #tpu.memory_space<vmem>>, vector<8x128xf32>
    %c0_1 = arith.constant 0 : index
    %c0_2 = arith.constant 0 : index
    %1 = vector.load %arg2[%c0_1, %c0_2] : memref<8x128xf32, #tpu.memory_space<vmem>>, vector<8x128xf32>
    %c0_3 = arith.constant 0 : index
    %c0_4 = arith.constant 0 : index
    %2 = vector.load %arg3[%c0_3, %c0_4] : memref<8x128xf32, #tpu.memory_space<vmem>>, vector<8x128xf32>
    %cst = arith.constant 5.000000e-01 : f32
    %3 = vector.broadcast %cst : f32 to vector<8x128xf32>
    %4 = arith.mulf %3, %1 : vector<8x128xf32>
    %5 = math.exp %4 : vector<8x128xf32>
    %6 = arith.mulf %2, %5 : vector<8x128xf32>
    %7 = arith.addf %0, %6 : vector<8x128xf32>
    %c0_5 = arith.constant 0 : index
    %c0_6 = arith.constant 0 : index
    %8 = vector.load %arg4[%c0_5, %c0_6] : memref<8x128xf32, #tpu.memory_space<vmem>>, vector<8x128xf32>
    tpu.vector_store %arg4[%c0_5, %c0_6], %7 {strides = array<i32>} : memref<8x128xf32, #tpu.memory_space<vmem>>, vector<8x128xf32>,
    %9 = arith.mulf %5, %5 : vector<8x128xf32>
    %cst_7 = arith.constant 1.000000e+00 : f32
    %10 = vector.broadcast %cst_7 : f32 to vector<8x128xf32>
    %11 = arith.addf %10, %1 : vector<8x128xf32>
    %12 = arith.mulf %0, %0 : vector<8x128xf32>
    %13 = arith.subf %11, %12 : vector<8x128xf32>
    %14 = arith.subf %13, %9 : vector<8x128xf32>
    %cst_8 = arith.constant -5.000000e-01 : f32
    %15 = vector.broadcast %cst_8 : f32 to vector<8x128xf32>
    %16 = arith.mulf %15, %14 : vector<8x128xf32>
    %17 = vector.shape_cast %16 : vector<8x128xf32> to vector<1x8x128xf32>
    %cst_9 = arith.constant dense<0.000000e+00> : vector<1xf32>
    %18 = vector.multi_reduction <add>, %17, %cst_9 [1, 2] : vector<1x8x128xf32> to vector<1xf32>
    %19 = vector.shape_cast %18 : vector<1xf32> to vector<1x1x1xf32>
    %20 = vector.extract %19[0, 0, 0] : f32 from vector<1x1x1xf32>
    %21 = tpu.iota {dimensions = array<i32: 0>} : vector<8x128xi32>
    %22 = tpu.iota {dimensions = array<i32: 1>} : vector<8x128xi32>
    %c0_i32 = arith.constant 0 : i32
    %23 = vector.broadcast %c0_i32 : i32 to vector<8x128xi32>
    %24 = arith.cmpi eq, %21, %23 : vector<8x128xi32>
    %c0_i32_10 = arith.constant 0 : i32
    %25 = vector.broadcast %c0_i32_10 : i32 to vector<8x128xi32>
    %26 = arith.cmpi eq, %22, %25 : vector<8x128xi32>
    %27 = arith.andi %24, %26 : vector<8x128xi1>
    %cst_11 = arith.constant 0.000000e+00 : f32
    %28 = vector.broadcast %20 : f32 to vector<8x128xf32>
    %29 = vector.broadcast %cst_11 : f32 to vector<8x128xf32>
    %30 = arith.select %27, %28, %29 : vector<8x128xi1>, vector<8x128xf32>
    %c0_12 = arith.constant 0 : index
    %c0_13 = arith.constant 0 : index
    %31 = vector.load %arg5[%c0_12, %c0_13] : memref<8x128xf32, #tpu.memory_space<vmem>>, vector<8x128xf32>
    tpu.vector_store %arg5[%c0_12, %c0_13], %30 {strides = array<i32>} : memref<8x128xf32, #tpu.memory_space<vmem>>, vector<8x128xf32>,
    return
  }
  func.func @transform_0(%arg0: i32) -> (i32, i32) {
    %c0_i32 = arith.constant 0 : i32
    %c0_i32_0 = arith.constant 0 : i32
    return %arg0, %c0_i32 : i32, i32
  }
  func.func @transform_1(%arg0: i32) -> (i32, i32) {
    %c0_i32 = arith.constant 0 : i32
    %c0_i32_0 = arith.constant 0 : i32
    return %arg0, %c0_i32 : i32, i32
  }
  func.func @transform_2(%arg0: i32) -> (i32, i32) {
    %c0_i32 = arith.constant 0 : i32
    %c0_i32_0 = arith.constant 0 : i32
    return %arg0, %c0_i32 : i32, i32
  }
  func.func @transform_3(%arg0: i32) -> (i32, i32) {
    %c0_i32 = arith.constant 0 : i32
    %c0_i32_0 = arith.constant 0 : i32
    return %arg0, %c0_i32 : i32, i32
  }
  func.func @transform_4(%arg0: i32) -> (i32, i32) {
    %c0_i32 = arith.constant 0 : i32
    %c0_i32_0 = arith.constant 0 : i32
    return %arg0, %c0_i32 : i32, i32
  }
}

</mosaic_0001>

<bundles_post_ra>
// kernel: tpu_custom_call.1
= control target key start
LH: loop header
LB: loop body
LE: loop exit
PB: predicated region body
PF: predicated region fallthrough
CT: control target
= control target key end

     0   :  { %10 = vsyncpa [#allocation3], 0  ;;  %s334_s0 = inlined_call_operand.hbm [shape: f32[8,128], index: 0, kind: input, shape index: {}]   ;;  %s335_s1 = inlined_call_operand.hbm [shape: f32[8,128], index: 1, kind: input, shape index: {}]   ;;  %s336_s2 = inlined_call_operand.hbm [shape: f32[8,128], index: 2, kind: input, shape index: {}]   ;;  %s337_s3 = inlined_call_operand.hbm [shape: f32[8,128], index: 3, kind: output, shape index: {0}]   ;;  %s338_s4 = inlined_call_operand.hbm [shape: f32[8,128], index: 4, kind: output, shape index: {1}]  }
   0x1   :  { %11 = vsyncpa [#allocation6], 0 }
   0x2   :  { %12 = vsyncpa [#allocation4], 0 }
   0x3   :  { %13 = vsyncpa [#allocation10], 0  ;;  %s244_s15 = smov [#allocation5]   ;;  %s245_s17 = smov [#allocation2]  }
   0x4   :  { %s30_s16 = sshll.u32 %s244_s15, 4  ;;  %s20_s18 = sshll.u32 %s245_s17, 4  ;;  %s31_s16 = int_to_ptr.vmem [resolvable:$true] %s30_s16  ;;  %s21_s18 = int_to_ptr.vmem [resolvable:$true] %s20_s18 }
   0x5   :  { %s126_s21 = scalar_lea.hbm %s335_s1, 128 }
   0x6   :  { %p127_p0 = scmp.ne.s32.totalorder %s335_s1, %s126_s21  ;;  %p130_p1 = scmp.lt.u32.totalorder %s126_s21, %s335_s1 }
   0x8   :  { %p132_p2 = pnand %p130_p1, %p127_p0 }
   0xa   :  { %135 = shalt.err (!%p132_p2)
}
   0xb   :  { %s136_s26 = scalar_lea.vmem %s31_s16, 128  ;;  %p141_p4 = scmp.lt.s32.totalorder %s31_s16, %s31_s16 }
   0xc   :  { %p137_p3 = scmp.ne.s32.totalorder %s31_s16, %s136_s26  ;;  %p142_p5 = scmp.lt.s32.totalorder %s136_s26, %s136_s26 }
   0xe   :  { %p143_p6 = por %p142_p5, %p141_p4 }
  0x10   :  { %p144_p7 = pnand %p143_p6, %p137_p3 }
  0x12   :  { %147 = shalt.err (!%p144_p7)
}
  0x13   :  { %33 = dma.hbm_to_vmem [thread:$0]  %s335_s1, 128, %s31_s16, [#allocation6]  }
  0x14   :  { %s148_s5 = scalar_lea.hbm %s334_s0, 128 }
  0x15   :  { %p149_p8 = scmp.ne.s32.totalorder %s334_s0, %s148_s5  ;;  %p152_p9 = scmp.lt.u32.totalorder %s148_s5, %s334_s0 }
  0x17   :  { %p154_p10 = pnand %p152_p9, %p149_p8 }
  0x19   :  { %157 = shalt.err (!%p154_p10)
}
  0x1a   :  { %s158_s10 = scalar_lea.vmem %s21_s18, 128  ;;  %p163_p12 = scmp.lt.s32.totalorder %s21_s18, %s21_s18 }
  0x1b   :  { %p159_p11 = scmp.ne.s32.totalorder %s21_s18, %s158_s10  ;;  %p164_p13 = scmp.lt.s32.totalorder %s158_s10, %s158_s10 }
  0x1d   :  { %p165_p0 = por %p164_p13, %p163_p12 }
  0x1f   :  { %p166_p1 = pnand %p165_p0, %p159_p11 }
  0x21   :  { %169 = shalt.err (!%p166_p1)
}
  0x22   :  { %23 = dma.hbm_to_vmem [thread:$0]  %s334_s0, 128, %s21_s18, [#allocation3]  }
  0x23   :  { %s246_s12 = smov [#allocation7]   ;;  %s170_s16 = scalar_lea.hbm %s336_s2, 128 }
  0x24   :  { %s40_s13 = sshll.u32 %s246_s12, 4  ;;  %p171_p2 = scmp.ne.s32.totalorder %s336_s2, %s170_s16  ;;  %s41_s13 = int_to_ptr.vmem [resolvable:$true] %s40_s13 }
  0x25   :  { %p174_p3 = scmp.lt.u32.totalorder %s170_s16, %s336_s2 }
  0x27   :  { %p176_p4 = pnand %p174_p3, %p171_p2 }
  0x29   :  { %179 = shalt.err (!%p176_p4)
}
  0x2a   :  { %s180_s22 = scalar_lea.vmem %s41_s13, 128  ;;  %p185_p6 = scmp.lt.s32.totalorder %s41_s13, %s41_s13 }
  0x2b   :  { %p181_p5 = scmp.ne.s32.totalorder %s41_s13, %s180_s22  ;;  %p186_p7 = scmp.lt.s32.totalorder %s180_s22, %s180_s22 }
  0x2d   :  { %p187_p8 = por %p186_p7, %p185_p6 }
  0x2f   :  { %p188_p9 = pnand %p187_p8, %p181_p5 }
  0x31   :  { %191 = shalt.err (!%p188_p9)
}
  0x32   :  { %43 = dma.hbm_to_vmem [thread:$0]  %s336_s2, 128, %s41_s13, [#allocation6]  }
  0x33   :  { %236 = dma.done.wait [#allocation3], 128  }
  0x34   :  { %237 = vsyncadd [#allocation3], 4294967168 }
  0x35   :  { %238 = dma.done.wait [#allocation6], 256  }
  0x36   :  { %239 = vsyncadd [#allocation6], 4294967040  ;;  %v54_v0 = vld [vmem:[#allocation5] sm:$0xff]  ;;  %v53_v3 = vld [vmem:[#allocation2] sm:$0xff]  ;;  %s247_s2 = smov [#allocation8]  }
  0x37   :  { %v56_v1 = vmul.f32 0.5, %v54_v0  ;;  %v63_v4 = vadd.f32 1.0, %v54_v0  ;;  %v64_v5 = vmul.f32 %v53_v3, %v53_v3  ;;  %v55_v11 = vld [vmem:[#allocation7] sm:$0xff]  ;;  %s93_s23 = sshll.u32 %s247_s2, 4  ;;  %s94_s23 = int_to_ptr.vmem [resolvable:$true] %s93_s23 }
  0x38   :  { %s192_s24 = scalar_lea.vmem %s94_s23, 128  ;;  %p197_p11 = scmp.lt.s32.totalorder %s94_s23, %s94_s23 }
  0x39   :  { %v57_v2 = vmul.f32 1.442695, %v56_v1  ;;  %v65_v6 = vsub.f32 %v63_v4, %v64_v5  ;;  %p193_p10 = scmp.ne.s32.totalorder %s94_s23, %s192_s24  ;;  %p198_p12 = scmp.lt.s32.totalorder %s192_s24, %s192_s24 }
  0x3b   :  { %124 = vpow2.f32 %v57_v2  ;;  %p199_p13 = por %p198_p12, %p197_p11 }
  0x3d   :  { %p200_p0 = pnand %p199_p13, %p193_p10 }
  0x45   :  { %v125_v7 = vpop.eup %124 }
  0x46   :  { %v62_v8 = vmul.f32 %v125_v7, %v125_v7  ;;  %v59_v12 = vmul.f32 %v125_v7, %v55_v11 }
  0x48   :  { %v66_v9 = vsub.f32 %v65_v6, %v62_v8  ;;  %v60_v13 = vadd.f32 %v59_v12, %v53_v3 }
  0x4a   :  { %v67_v10 = vmul.f32 -0.5, %v66_v9  ;;  %61 = vst [vmem:[#allocation8] sm:$0xff] %v60_v13 }
  0x4c   :  { %68 = vadd.xlane.f32.xlu0 %v67_v10 }
  0x4d   :  { %203 = shalt.err (!%p200_p0)
}
  0x4e   :  { %s204_s27 = scalar_lea.hbm %s337_s3, 128 }
  0x4f   :  { %p205_p1 = scmp.ne.s32.totalorder %s337_s3, %s204_s27  ;;  %p208_p2 = scmp.lt.u32.totalorder %s204_s27, %s337_s3 }
  0x51   :  { %p210_p3 = pnand %p208_p2, %p205_p1 }
  0x53   :  { %213 = shalt.err (!%p210_p3)
}
  0x54   :  { %96 = dma.vmem_to_hbm [thread:$0]  %s94_s23, 128, %s337_s3, [#allocation4]   ;;  %v77_v21 = vlaneseq }
  0x55   :  { %s248_s8 = smov [#allocation9]  }
  0x56   :  { %v78_v22 = vshrl.u32 %v77_v21, 7  ;;  %v80_v23 = vand.u32 127, %v77_v21  ;;  %s103_s9 = sshll.u32 %s248_s8, 4  ;;  %s104_s9 = int_to_ptr.vmem [resolvable:$true] %s103_s9 }
  0x57   :  { %s214_s3 = scalar_lea.vmem %s104_s9, 128  ;;  %p219_p5 = scmp.lt.s32.totalorder %s104_s9, %s104_s9 }
  0x58   :  { %vm81_vm0 = vcmp.eq.s32.totalorder %v78_v22, 0  ;;  %vm82_vm1 = vcmp.eq.s32.totalorder %v80_v23, 0  ;;  %p215_p4 = scmp.ne.s32.totalorder %s104_s9, %s214_s3  ;;  %p220_p6 = scmp.lt.s32.totalorder %s214_s3, %s214_s3 }
  0x59   :  { %vm83_vm2 = vmand %vm81_vm0, %vm82_vm1 }
  0x5a   :  { %p221_p7 = por %p220_p6, %p219_p5 }
  0x5c   :  { %p222_p8 = pnand %p221_p7, %p215_p4 }
  0xd9   :  { %v69_v14 = vpop.xlane.xlu0 %68 }
  0xda   :  { %v70_v15 = vrot.slane %v69_v14, 4 }
  0xdc   :  { %v71_v16 = vadd.f32 %v70_v15, %v69_v14 }
  0xde   :  { %v72_v17 = vrot.slane %v71_v16, 2 }
  0xe0   :  { %v73_v18 = vadd.f32 %v72_v17, %v71_v16 }
  0xe2   :  { %v74_v19 = vrot.slane %v73_v18, 1 }
  0xe4   :  { %v75_v20 = vadd.f32 %v74_v19, %v73_v18 }
  0xe6   :  { %117 = vpush %v75_v20 }
 0x117   :  { %s118_s10 = spop %117 }
 0x118   :  { %v84_v24 = vstv %s118_s10 }
 0x119   :  { %v85_v25 = vsel %vm83_vm2, %v84_v24, 0.0 }
 0x11a   :  { %86 = vst [vmem:[#allocation9] sm:$0xff] %v85_v25 }
 0x11b   :  { %225 = shalt.err (!%p222_p8)
}
 0x11c   :  { %s226_s12 = scalar_lea.hbm %s338_s4, 128 }
 0x11d   :  { %p227_p9 = scmp.ne.s32.totalorder %s338_s4, %s226_s12  ;;  %p230_p10 = scmp.lt.u32.totalorder %s226_s12, %s338_s4 }
 0x11f   :  { %p232_p11 = pnand %p230_p10, %p227_p9 }
 0x121   :  { %235 = shalt.err (!%p232_p11)
}
 0x122   :  { %106 = dma.vmem_to_hbm [thread:$0]  %s104_s9, 128, %s338_s4, [#allocation10]  }
 0x123   :  { %240 = dma.done.wait [#allocation4], 128  }
 0x124   :  { %241 = vsyncadd [#allocation4], 4294967168 }
 0x125   :  { %242 = dma.done.wait [#allocation10], 128  }
 0x126   :  { %243 = vsyncadd [#allocation10], 4294967168 }
 0x127   :  { %113 = vsyncpa [#allocation3], 1 }
 0x128   :  { %114 = vsyncpa [#allocation6], 1 }
 0x129   :  { %115 = vsyncpa [#allocation4], 1 }
 0x12a   :  { %116 = vsyncpa [#allocation10], 1 }

</bundles_post_ra>
